<compile_context>
chip_gen: v5e
topology: v5e:2x2
jax: 0.10.0
libtpu: 0.0.40
codegen_flags: <defaults>
</compile_context>

<pallas_src>
import functools
import math

import numpy as np
import jax
import jax.numpy as jnp
from jax.experimental import pallas as pl
from jax.experimental.pallas import tpu as pltpu


def _gaussian_taps_1d(ksize: int, sigma: float) -> np.ndarray:
    """1-D taps of the module's (slightly unusual) Gaussian:
       g(i) = 1/(sigma*sqrt(2*pi)) * exp(-((i-mean)/(2*sigma))**2).
       The module's 2-D kernel is outer(g, g)/sum(outer(g, g)) == outer(gn, gn)
       with gn = g/sum(g), so the filter is exactly separable with taps gn."""
    ax = np.arange(ksize, dtype=np.float32)
    mean = (ksize - 1) / 2.0
    g = (1.0 / (sigma * math.sqrt(2.0 * math.pi))) * np.exp(
        -(((ax - mean) / (2.0 * sigma)) ** 2)
    )
    return (g / g.sum()).astype(np.float64)


def _msd_pyramid_kernel(x_ref, lp_ref, hp_ref, *, levels, sub_w, g0, g1, g2):
    """One packed slab per grid step.

    x_ref : (1, H, Wp)           Wp = pack * W sub-images glued along lanes
    lp_ref: (1, levels, H, Wp)   low-pass of every pyramid level
    hp_ref: (1, levels, H, Wp)   high-pass = level_input - level_low_pass
    """
    x = x_ref[0].astype(jnp.float32)      # compute in f32 regardless of input dtype
    h, wp = x.shape

    col = jax.lax.broadcasted_iota(jnp.int32, (h, wp), 1)
    row = jax.lax.broadcasted_iota(jnp.int32, (h, wp), 0)
    if sub_w == wp:                        # a single image spans the lane axis
        at_left = col == 0
        at_right = col == (sub_w - 1)
    else:                                  # several images packed along the lanes
        cm = col % sub_w
        at_left = cm == 0
        at_right = cm == (sub_w - 1)
    at_top = row == 0
    at_bot = row == (h - 1)

    cur = x
    for p in range(levels):
        # ---- horizontal 3-tap (lane axis); reflect at every sub-image border.
        # pltpu.roll follows jnp.roll semantics but only accepts shift >= 0, so
        # the "+1 neighbour" is obtained with a cyclic roll by (size - 1).
        xl = pltpu.roll(cur, shift=1, axis=1)        # xl[:, j] = cur[:, j-1] (wraps)
        xr = pltpu.roll(cur, shift=wp - 1, axis=1)   # xr[:, j] = cur[:, j+1] (wraps)
        left = jnp.where(at_left, xr, xl)        # reflect: left nbr of col 0 is col 1
        right = jnp.where(at_right, xl, xr)      # reflect: right nbr of col W-1 is col W-2
        t = g1 * cur + g0 * left + g2 * right    # accumulator seeded with centre term

        # ---- vertical 3-tap (sublane axis); reflect at top/bottom rows
        tu = pltpu.roll(t, shift=1, axis=0)          # tu[i, :] = t[i-1, :] (wraps)
        td = pltpu.roll(t, shift=h - 1, axis=0)      # td[i, :] = t[i+1, :] (wraps)
        up = jnp.where(at_top, td, tu)
        down = jnp.where(at_bot, tu, td)
        lp = g1 * t + g0 * up + g2 * down

        lp_ref[0, p] = lp.astype(lp_ref.dtype)
        hp_ref[0, p] = (cur - lp).astype(hp_ref.dtype)
        cur = lp                                  # next pyramid level's input


def _choose_lane_pack(num_images: int, h: int, w: int, levels: int,
                      out_itemsize: int) -> int:
    """How many images to glue side-by-side along the lane (W) axis.

    Output stores are only lane-dense (unmasked vst) when the last dim is a
    multiple of 128; for narrow images we pack sub-images along W (the reflect
    boundary of each sub-image is rebuilt in-kernel with modulo masks).  The
    smallest dense packing is preferred (keeps grid steps for megacore), and is
    grown only while the per-step slab stays small and >= 2 steps remain."""
    if w >= 128 or num_images <= 1:
        return 1
    divisors = [g for g in range(1, num_images + 1) if num_images % g == 0]
    dense = [g for g in divisors if (g * w) % 128 == 0]
    if not dense:
        wide = [g for g in divisors if g * w <= 256]
        return wide[-1] if wide else 1
    per_image = h * w * (4 + 2 * levels * out_itemsize)   # in + 2*levels out
    best = dense[0]
    for g in dense:
        if num_images // g >= 2 and g * per_image <= 2 * 2**20:
            best = max(best, g)
    return best


def msd_pyramid_net(x, lpkrnlsz=3, lpkrnlsgm=1.0, pyrmdpth=5, out_dtype=None):
    """MSDPyramidNet.forward: x (N, C, H, W) -> (xlps, xhps), each (N, P*C, H, W)
    with channels ordered [level0_c0..level0_c(C-1), level1_c0, ...] (torch.cat dim=1)."""
    assert lpkrnlsz == 3, "kernel specialized to kernel_size=3 (module default)"
    assert pyrmdpth >= 1
    N, C, H, W = x.shape
    assert H >= 2 and W >= 2, "reflect padding needs H >= 2 and W >= 2"
    out_dtype = jnp.dtype(out_dtype) if out_dtype is not None else jnp.dtype(x.dtype)
    P = pyrmdpth
    nc = N * C

    g0, g1, g2 = (float(v) for v in _gaussian_taps_1d(lpkrnlsz, lpkrnlsgm))

    # ---- lane packing / blocking ------------------------------------------
    G = _choose_lane_pack(nc, H, W, P, out_dtype.itemsize)
    M = nc // G
    Wp = G * W

    x_flat = x.reshape(nc, H, W)
    if G > 1:
        # (nc,H,W) -> (M,G,H,W) -> (M,H,G,W) -> (M,H,G*W): layout plumbing only.
        x_in = x_flat.reshape(M, G, H, W).transpose(0, 2, 1, 3).reshape(M, H, Wp)
    else:
        x_in = x_flat

    kernel = functools.partial(
        _msd_pyramid_kernel, levels=P, sub_w=W, g0=g0, g1=g1, g2=g2
    )

    in_block = H * Wp * x.dtype.itemsize
    out_block = 2 * P * H * Wp * out_dtype.itemsize
    # double-buffered blocks + in-kernel temporaries, capped for v7x's 64 MiB VMEM
    vmem_limit = int(min(64 * 2**20, max(32 * 2**20, 3 * (in_block + out_block))))
    # TODO(synk): for very large images (whole-image block > ~10 MiB) tile H with a
    # pyramid-depth halo (and split across v7x's 2 TCs when the grid has 1 step).

    lp_pk, hp_pk = pl.pallas_call(
        kernel,
        out_shape=(
            jax.ShapeDtypeStruct((M, P, H, Wp), out_dtype),
            jax.ShapeDtypeStruct((M, P, H, Wp), out_dtype),
        ),
        grid_spec=pltpu.PrefetchScalarGridSpec(
            num_scalar_prefetch=0,
            grid=(M,),
            in_specs=[pl.BlockSpec((1, H, Wp), lambda i: (i, 0, 0))],
            out_specs=[
                pl.BlockSpec((1, P, H, Wp), lambda i: (i, 0, 0, 0)),
                pl.BlockSpec((1, P, H, Wp), lambda i: (i, 0, 0, 0)),
            ],
        ),
        compiler_params=pltpu.CompilerParams(
            dimension_semantics=("parallel",),
            vmem_limit_bytes=vmem_limit,
        ),
    )(x_in)

    def _unpack(o):
        if G > 1:
            o = o.reshape(M, P, H, G, W).transpose(0, 3, 1, 2, 4)   # (M, G, P, H, W)
        o = o.reshape(N, C, P, H, W).transpose(0, 2, 1, 3, 4)        # (N, P, C, H, W)
        return o.reshape(N, P * C, H, W)

    return _unpack(lp_pk), _unpack(hp_pk)


# ---------------------------------------------------------------------------
# Plain-JAX reference (mirrors the PyTorch module literally) for correctness.
# ---------------------------------------------------------------------------
def _reference_msd_pyramid(x, lpkrnlsz=3, lpkrnlsgm=1.0, pyrmdpth=5):
    N, C, H, W = x.shape
    pd = lpkrnlsz // 2
    ax = np.arange(lpkrnlsz, dtype=np.float32)
    mean = (lpkrnlsz - 1) / 2.0
    g = (1.0 / (lpkrnlsgm * math.sqrt(2.0 * math.pi))) * np.exp(
        -(((ax - mean) / (2.0 * lpkrnlsgm)) ** 2)
    )
    k2d = np.outer(g, g)
    k2d = (k2d / k2d.sum()).astype(np.float32)

    def lphp(z):
        zp = jnp.pad(z, ((0, 0), (0, 0), (pd, pd), (pd, pd)), mode="reflect")
        acc = jnp.zeros_like(z)
        for di in range(lpkrnlsz):
            for dj in range(lpkrnlsz):
                acc = acc + k2d[di, dj] * zp[:, :, di:di + H, dj:dj + W]
        return acc, z - acc

    lps, hps, cur = [], [], x
    for _ in range(pyrmdpth):
        lp, hp = lphp(cur)
        lps.append(lp)
        hps.append(hp)
        cur = lp
    return jnp.concatenate(lps, axis=1), jnp.concatenate(hps, axis=1)


if __name__ == "__main__":
    key = jax.random.PRNGKey(0)

    # Case 1: small NCHW input (packs 8 images of W=16 into a 128-lane slab).
    x = jax.random.normal(key, (2, 4, 16, 16), dtype=jnp.float32)
    lpx, hpx = msd_pyramid_net(x, lpkrnlsz=3, lpkrnlsgm=1.0, pyrmdpth=5)
    jax.block_until_ready((lpx, hpx))
    assert lpx.shape == (2, 20, 16, 16) and hpx.shape == (2, 20, 16, 16)
    lp_ref, hp_ref = _reference_msd_pyramid(x, 3, 1.0, 5)
    np.testing.assert_allclose(np.asarray(lpx), np.asarray(lp_ref), rtol=3e-5, atol=3e-5)
    np.testing.assert_allclose(np.asarray(hpx), np.asarray(hp_ref), rtol=3e-5, atol=3e-5)

    # Case 2: already lane-wide images (no packing, multi-step parallel grid).
    x2 = jax.random.normal(jax.random.fold_in(key, 1), (1, 3, 16, 128), dtype=jnp.float32)
    lpx2, hpx2 = msd_pyramid_net(x2, lpkrnlsz=3, lpkrnlsgm=1.0, pyrmdpth=5)
    jax.block_until_ready((lpx2, hpx2))
    lp_ref2, hp_ref2 = _reference_msd_pyramid(x2, 3, 1.0, 5)
    np.testing.assert_allclose(np.asarray(lpx2), np.asarray(lp_ref2), rtol=3e-5, atol=3e-5)
    np.testing.assert_allclose(np.asarray(hpx2), np.asarray(hp_ref2), rtol=3e-5, atol=3e-5)

    print("KERNEL_OK")
</pallas_src>

<mosaic_0001>
module attributes {stable_mosaic.version = 11 : i64} {
  func.func @_msd_pyramid_kernel(%arg0: i32, %arg1: memref<1x16x128xf32, #tpu.memory_space<vmem>>, %arg2: memref<1x5x16x128xf32, #tpu.memory_space<vmem>>, %arg3: memref<1x5x16x128xf32, #tpu.memory_space<vmem>>) attributes {dimension_semantics = [#tpu.dimension_semantics<parallel>], iteration_bounds = array<i64: 1>, scalar_prefetch = 0 : i64, scratch_operands = 0 : i64, tpu.core_type = #tpu.core_type<tc>, window_params = [{transform_indices = @transform_0, window_bounds = array<i64: 1, 16, 128>}, {transform_indices = @transform_1, window_bounds = array<i64: 1, 5, 16, 128>}, {transform_indices = @transform_2, window_bounds = array<i64: 1, 5, 16, 128>}]} {
    %c0 = arith.constant 0 : index
    %c0_0 = arith.constant 0 : index
    %c0_1 = arith.constant 0 : index
    %0 = vector.load %arg1[%c0, %c0_0, %c0_1] : memref<1x16x128xf32, #tpu.memory_space<vmem>>, vector<1x16x128xf32>
    %1 = vector.shape_cast %0 : vector<1x16x128xf32> to vector<16x128xf32>
    %2 = tpu.iota {dimensions = array<i32: 1>} : vector<16x128xi32>
    %3 = tpu.iota {dimensions = array<i32: 0>} : vector<16x128xi32>
    %c16_i32 = arith.constant 16 : i32
    %c0_i32 = arith.constant 0 : i32
    %4 = arith.cmpi eq, %c16_i32, %c0_i32 : i32
    %c1_i32 = arith.constant 1 : i32
    %5 = arith.select %4, %c1_i32, %c16_i32 : i32
    %6 = vector.broadcast %5 : i32 to vector<16x128xi32>
    %7 = arith.remsi %2, %6 : vector<16x128xi32>
    %c0_i32_2 = arith.constant 0 : i32
    %8 = vector.broadcast %c0_i32_2 : i32 to vector<16x128xi32>
    %9 = arith.cmpi ne, %7, %8 : vector<16x128xi32>
    %c0_i32_3 = arith.constant 0 : i32
    %10 = vector.broadcast %c0_i32_3 : i32 to vector<16x128xi32>
    %11 = arith.cmpi slt, %7, %10 : vector<16x128xi32>
    %c0_i32_4 = arith.constant 0 : i32
    %12 = arith.cmpi slt, %5, %c0_i32_4 : i32
    %13 = vector.broadcast %12 : i1 to vector<16x128xi1>
    %14 = vector.broadcast %13 : vector<16x128xi1> to vector<16x128xi1>
    %15 = arith.xori %11, %14 : vector<16x128xi1>
    %16 = arith.andi %15, %9 : vector<16x128xi1>
    %17 = vector.broadcast %5 : i32 to vector<16x128xi32>
    %18 = arith.addi %7, %17 : vector<16x128xi32>
    %19 = arith.select %16, %18, %7 : vector<16x128xi1>, vector<16x128xi32>
    %c0_i32_5 = arith.constant 0 : i32
    %20 = vector.broadcast %c0_i32_5 : i32 to vector<16x128xi32>
    %21 = arith.cmpi eq, %19, %20 : vector<16x128xi32>
    %c15_i32 = arith.constant 15 : i32
    %22 = vector.broadcast %c15_i32 : i32 to vector<16x128xi32>
    %23 = arith.cmpi eq, %19, %22 : vector<16x128xi32>
    %c0_i32_6 = arith.constant 0 : i32
    %24 = vector.broadcast %c0_i32_6 : i32 to vector<16x128xi32>
    %25 = arith.cmpi eq, %3, %24 : vector<16x128xi32>
    %c15_i32_7 = arith.constant 15 : i32
    %26 = vector.broadcast %c15_i32_7 : i32 to vector<16x128xi32>
    %27 = arith.cmpi eq, %3, %26 : vector<16x128xi32>
    %c1_i32_8 = arith.constant 1 : i32
    %28 = tpu.dynamic_rotate %1 by %c1_i32_8 dim 1 : vector<16x128xf32>, i32 -> vector<16x128xf32>
    %c127_i32 = arith.constant 127 : i32
    %29 = tpu.dynamic_rotate %1 by %c127_i32 dim 1 : vector<16x128xf32>, i32 -> vector<16x128xf32>
    %30 = arith.select %21, %29, %28 : vector<16x128xi1>, vector<16x128xf32>
    %31 = arith.select %23, %28, %29 : vector<16x128xi1>, vector<16x128xf32>
    %cst = arith.constant 0.3909913 : f32
    %32 = vector.broadcast %cst : f32 to vector<16x128xf32>
    %33 = arith.mulf %32, %1 : vector<16x128xf32>
    %cst_9 = arith.constant 0.304504305 : f32
    %34 = vector.broadcast %cst_9 : f32 to vector<16x128xf32>
    %35 = arith.mulf %34, %30 : vector<16x128xf32>
    %36 = arith.addf %33, %35 : vector<16x128xf32>
    %cst_10 = arith.constant 0.304504305 : f32
    %37 = vector.broadcast %cst_10 : f32 to vector<16x128xf32>
    %38 = arith.mulf %37, %31 : vector<16x128xf32>
    %39 = arith.addf %36, %38 : vector<16x128xf32>
    %c1_i32_11 = arith.constant 1 : i32
    %40 = tpu.dynamic_rotate %39 by %c1_i32_11 dim 0 : vector<16x128xf32>, i32 -> vector<16x128xf32>
    %c15_i32_12 = arith.constant 15 : i32
    %41 = tpu.dynamic_rotate %39 by %c15_i32_12 dim 0 : vector<16x128xf32>, i32 -> vector<16x128xf32>
    %42 = arith.select %25, %41, %40 : vector<16x128xi1>, vector<16x128xf32>
    %43 = arith.select %27, %40, %41 : vector<16x128xi1>, vector<16x128xf32>
    %cst_13 = arith.constant 0.3909913 : f32
    %44 = vector.broadcast %cst_13 : f32 to vector<16x128xf32>
    %45 = arith.mulf %44, %39 : vector<16x128xf32>
    %cst_14 = arith.constant 0.304504305 : f32
    %46 = vector.broadcast %cst_14 : f32 to vector<16x128xf32>
    %47 = arith.mulf %46, %42 : vector<16x128xf32>
    %48 = arith.addf %45, %47 : vector<16x128xf32>
    %cst_15 = arith.constant 0.304504305 : f32
    %49 = vector.broadcast %cst_15 : f32 to vector<16x128xf32>
    %50 = arith.mulf %49, %43 : vector<16x128xf32>
    %51 = arith.addf %48, %50 : vector<16x128xf32>
    %c0_16 = arith.constant 0 : index
    %c0_17 = arith.constant 0 : index
    %c0_18 = arith.constant 0 : index
    %c0_19 = arith.constant 0 : index
    %52 = vector.load %arg2[%c0_16, %c0_17, %c0_18, %c0_19] : memref<1x5x16x128xf32, #tpu.memory_space<vmem>>, vector<1x1x16x128xf32>
    %53 = vector.shape_cast %52 : vector<1x1x16x128xf32> to vector<16x128xf32>
    %54 = vector.shape_cast %51 : vector<16x128xf32> to vector<1x1x16x128xf32>
    tpu.vector_store %arg2[%c0_16, %c0_17, %c0_18, %c0_19], %54 {strides = array<i32>} : memref<1x5x16x128xf32, #tpu.memory_space<vmem>>, vector<1x1x16x128xf32>,
    %55 = arith.subf %1, %51 : vector<16x128xf32>
    %c0_20 = arith.constant 0 : index
    %c0_21 = arith.constant 0 : index
    %c0_22 = arith.constant 0 : index
    %c0_23 = arith.constant 0 : index
    %56 = vector.load %arg3[%c0_20, %c0_21, %c0_22, %c0_23] : memref<1x5x16x128xf32, #tpu.memory_space<vmem>>, vector<1x1x16x128xf32>
    %57 = vector.shape_cast %56 : vector<1x1x16x128xf32> to vector<16x128xf32>
    %58 = vector.shape_cast %55 : vector<16x128xf32> to vector<1x1x16x128xf32>
    tpu.vector_store %arg3[%c0_20, %c0_21, %c0_22, %c0_23], %58 {strides = array<i32>} : memref<1x5x16x128xf32, #tpu.memory_space<vmem>>, vector<1x1x16x128xf32>,
    %c1_i32_24 = arith.constant 1 : i32
    %59 = tpu.dynamic_rotate %51 by %c1_i32_24 dim 1 : vector<16x128xf32>, i32 -> vector<16x128xf32>
    %c127_i32_25 = arith.constant 127 : i32
    %60 = tpu.dynamic_rotate %51 by %c127_i32_25 dim 1 : vector<16x128xf32>, i32 -> vector<16x128xf32>
    %61 = arith.select %21, %60, %59 : vector<16x128xi1>, vector<16x128xf32>
    %62 = arith.select %23, %59, %60 : vector<16x128xi1>, vector<16x128xf32>
    %cst_26 = arith.constant 0.3909913 : f32
    %63 = vector.broadcast %cst_26 : f32 to vector<16x128xf32>
    %64 = arith.mulf %63, %51 : vector<16x128xf32>
    %cst_27 = arith.constant 0.304504305 : f32
    %65 = vector.broadcast %cst_27 : f32 to vector<16x128xf32>
    %66 = arith.mulf %65, %61 : vector<16x128xf32>
    %67 = arith.addf %64, %66 : vector<16x128xf32>
    %cst_28 = arith.constant 0.304504305 : f32
    %68 = vector.broadcast %cst_28 : f32 to vector<16x128xf32>
    %69 = arith.mulf %68, %62 : vector<16x128xf32>
    %70 = arith.addf %67, %69 : vector<16x128xf32>
    %c1_i32_29 = arith.constant 1 : i32
    %71 = tpu.dynamic_rotate %70 by %c1_i32_29 dim 0 : vector<16x128xf32>, i32 -> vector<16x128xf32>
    %c15_i32_30 = arith.constant 15 : i32
    %72 = tpu.dynamic_rotate %70 by %c15_i32_30 dim 0 : vector<16x128xf32>, i32 -> vector<16x128xf32>
    %73 = arith.select %25, %72, %71 : vector<16x128xi1>, vector<16x128xf32>
    %74 = arith.select %27, %71, %72 : vector<16x128xi1>, vector<16x128xf32>
    %cst_31 = arith.constant 0.3909913 : f32
    %75 = vector.broadcast %cst_31 : f32 to vector<16x128xf32>
    %76 = arith.mulf %75, %70 : vector<16x128xf32>
    %cst_32 = arith.constant 0.304504305 : f32
    %77 = vector.broadcast %cst_32 : f32 to vector<16x128xf32>
    %78 = arith.mulf %77, %73 : vector<16x128xf32>
    %79 = arith.addf %76, %78 : vector<16x128xf32>
    %cst_33 = arith.constant 0.304504305 : f32
    %80 = vector.broadcast %cst_33 : f32 to vector<16x128xf32>
    %81 = arith.mulf %80, %74 : vector<16x128xf32>
    %82 = arith.addf %79, %81 : vector<16x128xf32>
    %c0_34 = arith.constant 0 : index
    %c1 = arith.constant 1 : index
    %c0_35 = arith.constant 0 : index
    %c0_36 = arith.constant 0 : index
    %83 = vector.load %arg2[%c0_34, %c1, %c0_35, %c0_36] : memref<1x5x16x128xf32, #tpu.memory_space<vmem>>, vector<1x1x16x128xf32>
    %84 = vector.shape_cast %83 : vector<1x1x16x128xf32> to vector<16x128xf32>
    %85 = vector.shape_cast %82 : vector<16x128xf32> to vector<1x1x16x128xf32>
    tpu.vector_store %arg2[%c0_34, %c1, %c0_35, %c0_36], %85 {strides = array<i32>} : memref<1x5x16x128xf32, #tpu.memory_space<vmem>>, vector<1x1x16x128xf32>,
    %86 = arith.subf %51, %82 : vector<16x128xf32>
    %c0_37 = arith.constant 0 : index
    %c1_38 = arith.constant 1 : index
    %c0_39 = arith.constant 0 : index
    %c0_40 = arith.constant 0 : index
    %87 = vector.load %arg3[%c0_37, %c1_38, %c0_39, %c0_40] : memref<1x5x16x128xf32, #tpu.memory_space<vmem>>, vector<1x1x16x128xf32>
    %88 = vector.shape_cast %87 : vector<1x1x16x128xf32> to vector<16x128xf32>
    %89 = vector.shape_cast %86 : vector<16x128xf32> to vector<1x1x16x128xf32>
    tpu.vector_store %arg3[%c0_37, %c1_38, %c0_39, %c0_40], %89 {strides = array<i32>} : memref<1x5x16x128xf32, #tpu.memory_space<vmem>>, vector<1x1x16x128xf32>,
    %c1_i32_41 = arith.constant 1 : i32
    %90 = tpu.dynamic_rotate %82 by %c1_i32_41 dim 1 : vector<16x128xf32>, i32 -> vector<16x128xf32>
    %c127_i32_42 = arith.constant 127 : i32
    %91 = tpu.dynamic_rotate %82 by %c127_i32_42 dim 1 : vector<16x128xf32>, i32 -> vector<16x128xf32>
    %92 = arith.select %21, %91, %90 : vector<16x128xi1>, vector<16x128xf32>
    %93 = arith.select %23, %90, %91 : vector<16x128xi1>, vector<16x128xf32>
    %cst_43 = arith.constant 0.3909913 : f32
    %94 = vector.broadcast %cst_43 : f32 to vector<16x128xf32>
    %95 = arith.mulf %94, %82 : vector<16x128xf32>
    %cst_44 = arith.constant 0.304504305 : f32
    %96 = vector.broadcast %cst_44 : f32 to vector<16x128xf32>
    %97 = arith.mulf %96, %92 : vector<16x128xf32>
    %98 = arith.addf %95, %97 : vector<16x128xf32>
    %cst_45 = arith.constant 0.304504305 : f32
    %99 = vector.broadcast %cst_45 : f32 to vector<16x128xf32>
    %100 = arith.mulf %99, %93 : vector<16x128xf32>
    %101 = arith.addf %98, %100 : vector<16x128xf32>
    %c1_i32_46 = arith.constant 1 : i32
    %102 = tpu.dynamic_rotate %101 by %c1_i32_46 dim 0 : vector<16x128xf32>, i32 -> vector<16x128xf32>
    %c15_i32_47 = arith.constant 15 : i32
    %103 = tpu.dynamic_rotate %101 by %c15_i32_47 dim 0 : vector<16x128xf32>, i32 -> vector<16x128xf32>
    %104 = arith.select %25, %103, %102 : vector<16x128xi1>, vector<16x128xf32>
    %105 = arith.select %27, %102, %103 : vector<16x128xi1>, vector<16x128xf32>
    %cst_48 = arith.constant 0.3909913 : f32
    %106 = vector.broadcast %cst_48 : f32 to vector<16x128xf32>
    %107 = arith.mulf %106, %101 : vector<16x128xf32>
    %cst_49 = arith.constant 0.304504305 : f32
    %108 = vector.broadcast %cst_49 : f32 to vector<16x128xf32>
    %109 = arith.mulf %108, %104 : vector<16x128xf32>
    %110 = arith.addf %107, %109 : vector<16x128xf32>
    %cst_50 = arith.constant 0.304504305 : f32
    %111 = vector.broadcast %cst_50 : f32 to vector<16x128xf32>
    %112 = arith.mulf %111, %105 : vector<16x128xf32>
    %113 = arith.addf %110, %112 : vector<16x128xf32>
    %c0_51 = arith.constant 0 : index
    %c2 = arith.constant 2 : index
    %c0_52 = arith.constant 0 : index
    %c0_53 = arith.constant 0 : index
    %114 = vector.load %arg2[%c0_51, %c2, %c0_52, %c0_53] : memref<1x5x16x128xf32, #tpu.memory_space<vmem>>, vector<1x1x16x128xf32>
    %115 = vector.shape_cast %114 : vector<1x1x16x128xf32> to vector<16x128xf32>
    %116 = vector.shape_cast %113 : vector<16x128xf32> to vector<1x1x16x128xf32>
    tpu.vector_store %arg2[%c0_51, %c2, %c0_52, %c0_53], %116 {strides = array<i32>} : memref<1x5x16x128xf32, #tpu.memory_space<vmem>>, vector<1x1x16x128xf32>,
    %117 = arith.subf %82, %113 : vector<16x128xf32>
    %c0_54 = arith.constant 0 : index
    %c2_55 = arith.constant 2 : index
    %c0_56 = arith.constant 0 : index
    %c0_57 = arith.constant 0 : index
    %118 = vector.load %arg3[%c0_54, %c2_55, %c0_56, %c0_57] : memref<1x5x16x128xf32, #tpu.memory_space<vmem>>, vector<1x1x16x128xf32>
    %119 = vector.shape_cast %118 : vector<1x1x16x128xf32> to vector<16x128xf32>
    %120 = vector.shape_cast %117 : vector<16x128xf32> to vector<1x1x16x128xf32>
    tpu.vector_store %arg3[%c0_54, %c2_55, %c0_56, %c0_57], %120 {strides = array<i32>} : memref<1x5x16x128xf32, #tpu.memory_space<vmem>>, vector<1x1x16x128xf32>,
    %c1_i32_58 = arith.constant 1 : i32
    %121 = tpu.dynamic_rotate %113 by %c1_i32_58 dim 1 : vector<16x128xf32>, i32 -> vector<16x128xf32>
    %c127_i32_59 = arith.constant 127 : i32
    %122 = tpu.dynamic_rotate %113 by %c127_i32_59 dim 1 : vector<16x128xf32>, i32 -> vector<16x128xf32>
    %123 = arith.select %21, %122, %121 : vector<16x128xi1>, vector<16x128xf32>
    %124 = arith.select %23, %121, %122 : vector<16x128xi1>, vector<16x128xf32>
    %cst_60 = arith.constant 0.3909913 : f32
    %125 = vector.broadcast %cst_60 : f32 to vector<16x128xf32>
    %126 = arith.mulf %125, %113 : vector<16x128xf32>
    %cst_61 = arith.constant 0.304504305 : f32
    %127 = vector.broadcast %cst_61 : f32 to vector<16x128xf32>
    %128 = arith.mulf %127, %123 : vector<16x128xf32>
    %129 = arith.addf %126, %128 : vector<16x128xf32>
    %cst_62 = arith.constant 0.304504305 : f32
    %130 = vector.broadcast %cst_62 : f32 to vector<16x128xf32>
    %131 = arith.mulf %130, %124 : vector<16x128xf32>
    %132 = arith.addf %129, %131 : vector<16x128xf32>
    %c1_i32_63 = arith.constant 1 : i32
    %133 = tpu.dynamic_rotate %132 by %c1_i32_63 dim 0 : vector<16x128xf32>, i32 -> vector<16x128xf32>
    %c15_i32_64 = arith.constant 15 : i32
    %134 = tpu.dynamic_rotate %132 by %c15_i32_64 dim 0 : vector<16x128xf32>, i32 -> vector<16x128xf32>
    %135 = arith.select %25, %134, %133 : vector<16x128xi1>, vector<16x128xf32>
    %136 = arith.select %27, %133, %134 : vector<16x128xi1>, vector<16x128xf32>
    %cst_65 = arith.constant 0.3909913 : f32
    %137 = vector.broadcast %cst_65 : f32 to vector<16x128xf32>
    %138 = arith.mulf %137, %132 : vector<16x128xf32>
    %cst_66 = arith.constant 0.304504305 : f32
    %139 = vector.broadcast %cst_66 : f32 to vector<16x128xf32>
    %140 = arith.mulf %139, %135 : vector<16x128xf32>
    %141 = arith.addf %138, %140 : vector<16x128xf32>
    %cst_67 = arith.constant 0.304504305 : f32
    %142 = vector.broadcast %cst_67 : f32 to vector<16x128xf32>
    %143 = arith.mulf %142, %136 : vector<16x128xf32>
    %144 = arith.addf %141, %143 : vector<16x128xf32>
    %c0_68 = arith.constant 0 : index
    %c3 = arith.constant 3 : index
    %c0_69 = arith.constant 0 : index
    %c0_70 = arith.constant 0 : index
    %145 = vector.load %arg2[%c0_68, %c3, %c0_69, %c0_70] : memref<1x5x16x128xf32, #tpu.memory_space<vmem>>, vector<1x1x16x128xf32>
    %146 = vector.shape_cast %145 : vector<1x1x16x128xf32> to vector<16x128xf32>
    %147 = vector.shape_cast %144 : vector<16x128xf32> to vector<1x1x16x128xf32>
    tpu.vector_store %arg2[%c0_68, %c3, %c0_69, %c0_70], %147 {strides = array<i32>} : memref<1x5x16x128xf32, #tpu.memory_space<vmem>>, vector<1x1x16x128xf32>,
    %148 = arith.subf %113, %144 : vector<16x128xf32>
    %c0_71 = arith.constant 0 : index
    %c3_72 = arith.constant 3 : index
    %c0_73 = arith.constant 0 : index
    %c0_74 = arith.constant 0 : index
    %149 = vector.load %arg3[%c0_71, %c3_72, %c0_73, %c0_74] : memref<1x5x16x128xf32, #tpu.memory_space<vmem>>, vector<1x1x16x128xf32>
    %150 = vector.shape_cast %149 : vector<1x1x16x128xf32> to vector<16x128xf32>
    %151 = vector.shape_cast %148 : vector<16x128xf32> to vector<1x1x16x128xf32>
    tpu.vector_store %arg3[%c0_71, %c3_72, %c0_73, %c0_74], %151 {strides = array<i32>} : memref<1x5x16x128xf32, #tpu.memory_space<vmem>>, vector<1x1x16x128xf32>,
    %c1_i32_75 = arith.constant 1 : i32
    %152 = tpu.dynamic_rotate %144 by %c1_i32_75 dim 1 : vector<16x128xf32>, i32 -> vector<16x128xf32>
    %c127_i32_76 = arith.constant 127 : i32
    %153 = tpu.dynamic_rotate %144 by %c127_i32_76 dim 1 : vector<16x128xf32>, i32 -> vector<16x128xf32>
    %154 = arith.select %21, %153, %152 : vector<16x128xi1>, vector<16x128xf32>
    %155 = arith.select %23, %152, %153 : vector<16x128xi1>, vector<16x128xf32>
    %cst_77 = arith.constant 0.3909913 : f32
    %156 = vector.broadcast %cst_77 : f32 to vector<16x128xf32>
    %157 = arith.mulf %156, %144 : vector<16x128xf32>
    %cst_78 = arith.constant 0.304504305 : f32
    %158 = vector.broadcast %cst_78 : f32 to vector<16x128xf32>
    %159 = arith.mulf %158, %154 : vector<16x128xf32>
    %160 = arith.addf %157, %159 : vector<16x128xf32>
    %cst_79 = arith.constant 0.304504305 : f32
    %161 = vector.broadcast %cst_79 : f32 to vector<16x128xf32>
    %162 = arith.mulf %161, %155 : vector<16x128xf32>
    %163 = arith.addf %160, %162 : vector<16x128xf32>
    %c1_i32_80 = arith.constant 1 : i32
    %164 = tpu.dynamic_rotate %163 by %c1_i32_80 dim 0 : vector<16x128xf32>, i32 -> vector<16x128xf32>
    %c15_i32_81 = arith.constant 15 : i32
    %165 = tpu.dynamic_rotate %163 by %c15_i32_81 dim 0 : vector<16x128xf32>, i32 -> vector<16x128xf32>
    %166 = arith.select %25, %165, %164 : vector<16x128xi1>, vector<16x128xf32>
    %167 = arith.select %27, %164, %165 : vector<16x128xi1>, vector<16x128xf32>
    %cst_82 = arith.constant 0.3909913 : f32
    %168 = vector.broadcast %cst_82 : f32 to vector<16x128xf32>
    %169 = arith.mulf %168, %163 : vector<16x128xf32>
    %cst_83 = arith.constant 0.304504305 : f32
    %170 = vector.broadcast %cst_83 : f32 to vector<16x128xf32>
    %171 = arith.mulf %170, %166 : vector<16x128xf32>
    %172 = arith.addf %169, %171 : vector<16x128xf32>
    %cst_84 = arith.constant 0.304504305 : f32
    %173 = vector.broadcast %cst_84 : f32 to vector<16x128xf32>
    %174 = arith.mulf %173, %167 : vector<16x128xf32>
    %175 = arith.addf %172, %174 : vector<16x128xf32>
    %c0_85 = arith.constant 0 : index
    %c4 = arith.constant 4 : index
    %c0_86 = arith.constant 0 : index
    %c0_87 = arith.constant 0 : index
    %176 = vector.load %arg2[%c0_85, %c4, %c0_86, %c0_87] : memref<1x5x16x128xf32, #tpu.memory_space<vmem>>, vector<1x1x16x128xf32>
    %177 = vector.shape_cast %176 : vector<1x1x16x128xf32> to vector<16x128xf32>
    %178 = vector.shape_cast %175 : vector<16x128xf32> to vector<1x1x16x128xf32>
    tpu.vector_store %arg2[%c0_85, %c4, %c0_86, %c0_87], %178 {strides = array<i32>} : memref<1x5x16x128xf32, #tpu.memory_space<vmem>>, vector<1x1x16x128xf32>,
    %179 = arith.subf %144, %175 : vector<16x128xf32>
    %c0_88 = arith.constant 0 : index
    %c4_89 = arith.constant 4 : index
    %c0_90 = arith.constant 0 : index
    %c0_91 = arith.constant 0 : index
    %180 = vector.load %arg3[%c0_88, %c4_89, %c0_90, %c0_91] : memref<1x5x16x128xf32, #tpu.memory_space<vmem>>, vector<1x1x16x128xf32>
    %181 = vector.shape_cast %180 : vector<1x1x16x128xf32> to vector<16x128xf32>
    %182 = vector.shape_cast %179 : vector<16x128xf32> to vector<1x1x16x128xf32>
    tpu.vector_store %arg3[%c0_88, %c4_89, %c0_90, %c0_91], %182 {strides = array<i32>} : memref<1x5x16x128xf32, #tpu.memory_space<vmem>>, vector<1x1x16x128xf32>,
    return
  }
  func.func @transform_0(%arg0: i32) -> (i32, i32, i32) {
    %c0_i32 = arith.constant 0 : i32
    %c0_i32_0 = arith.constant 0 : i32
    %c0_i32_1 = arith.constant 0 : i32
    return %arg0, %c0_i32, %c0_i32_0 : i32, i32, i32
  }
  func.func @transform_1(%arg0: i32) -> (i32, i32, i32, i32) {
    %c0_i32 = arith.constant 0 : i32
    %c0_i32_0 = arith.constant 0 : i32
    %c0_i32_1 = arith.constant 0 : i32
    %c0_i32_2 = arith.constant 0 : i32
    return %arg0, %c0_i32, %c0_i32_0, %c0_i32_1 : i32, i32, i32, i32
  }
  func.func @transform_2(%arg0: i32) -> (i32, i32, i32, i32) {
    %c0_i32 = arith.constant 0 : i32
    %c0_i32_0 = arith.constant 0 : i32
    %c0_i32_1 = arith.constant 0 : i32
    %c0_i32_2 = arith.constant 0 : i32
    return %arg0, %c0_i32, %c0_i32_0, %c0_i32_1 : i32, i32, i32, i32
  }
}

</mosaic_0001>

<bundles_post_ra>
// kernel: tpu_custom_call.1
= control target key start
LH: loop header
LB: loop body
LE: loop exit
PB: predicated region body
PF: predicated region fallthrough
CT: control target
= control target key end

     0   :  { %8 = vsyncpa [#allocation3], 0  ;;  %s634_s0 = inlined_call_operand.hbm [shape: f32[1,16,128], index: 0, kind: input, shape index: {}]   ;;  %s635_s1 = inlined_call_operand.hbm [shape: f32[1,5,16,128], index: 1, kind: output, shape index: {0}]   ;;  %s636_s2 = inlined_call_operand.hbm [shape: f32[1,5,16,128], index: 2, kind: output, shape index: {1}]  }
   0x1   :  { %9 = vsyncpa [#allocation4], 0 }
   0x2   :  { %10 = vsyncpa [#allocation7], 0  ;;  %s15_s11 = sshll.u32 %s634_s0, 4  ;;  %s435_s12 = smov [#allocation2]   ;;  %s16_s11 = int_to_ptr.hbm [resolvable:$true] %s15_s11 }
   0x3   :  { %s17_s13 = sshll.u32 %s435_s12, 4  ;;  %s436_s14 = smov 128   ;;  %s18_s13 = int_to_ptr.vmem [resolvable:$true] %s17_s13 }
   0x4   :  { %s437_s15 = smov 8  }
   0x5   :  { %23 = dma.hbm_to_vmem [thread:$0]  %s16_s11, 256, %s18_s13, [#allocation3], %s436_s14, %s436_s14, %s437_s15  }
   0x6   :  { %429 = dma.done.wait [#allocation3], 256  }
   0x7   :  { %430 = vsyncadd [#allocation3], 4294967040  ;;  %v463_v0 = vld [vmem:[#allocation2] sm:$0xff]  ;;  %s438_s16 = smov 127   ;;  %s439_s17 = smov 1   ;;  %v29_v1 = vld [vmem:[#allocation2 + $0x8] sm:$0xff]  ;;  %v30_v2 = vlaneseq }
   0x8   :  { %57 = vrot.lane.b32.xlu1 %v463_v0, %s438_s16  ;;  %53 = vrot.lane.b32.xlu0 %v463_v0, %s439_s17  ;;  %v65_v10 = vmul.f32 0.3909913, %v463_v0  ;;  %v66_v16 = vmul.f32 0.3909913, %v29_v1  ;;  %s440_s0 = smov [#allocation5]   ;;  %s319_s21 = sshll.u32 %s635_s1, 4  ;;  %s320_s21 = int_to_ptr.hbm [resolvable:$true] %s319_s21 }
   0x9   :  { %v31_v3 = vand.u32 127, %v30_v2  ;;  %v484_v13 = vshrl.u32 %v30_v2, 7  ;;  %s317_s18 = sshll.u32 %s440_s0, 4  ;;  %s441_s22 = smov [#allocation6]   ;;  %s318_s18 = int_to_ptr.vmem [resolvable:$true] %s317_s18 }
   0xa   :  { %s330_s23 = sshll.u32 %s441_s22, 4  ;;  %s332_s26 = sshll.u32 %s636_s2, 4  ;;  %s331_s23 = int_to_ptr.vmem [resolvable:$true] %s330_s23  ;;  %s333_s26 = int_to_ptr.hbm [resolvable:$true] %s332_s26 }
   0xb   :  { %v39_v4 = vand.u32 15, %v31_v3  ;;  %v491_v22 = vadd.s32 8, %v484_v13  ;;  %vm49_vm2 = vcmp.eq.s32.totalorder %v484_v13, 0  ;;  %vm77_vm4 = vcmp.lt.s32.totalorder %v484_v13, 1 }
   0xc   :  { %vm82_vm5 = vcmp.lt.s32.totalorder %v484_v13, 7 }
   0xd   :  { %vm471_vm0 = vcmp.eq.s32.totalorder %v39_v4, 0  ;;  %vm477_vm1 = vcmp.eq.s32.totalorder %v39_v4, 15  ;;  %vm52_vm3 = vcmp.eq.s32.totalorder %v491_v22, 15 }
  0x10   :  { %59 = vrot.lane.b32.xlu1 %v29_v1, %s438_s16  ;;  %55 = vrot.lane.b32.xlu0 %v29_v1, %s439_s17 }
  0x7a   :  { %v58_v6 = vpop.permute.xlu1 %57  ;;  %v54_v7 = vpop.permute.xlu0 %53 }
  0x7b   :  { %v61_v8 = vsel %vm471_vm0, %v58_v6, %v54_v7  ;;  %v63_v12 = vsel %vm477_vm1, %v54_v7, %v58_v6 }
  0x7c   :  { %v67_v11 = vmul.f32 0.3045043, %v61_v8  ;;  %v71_v20 = vmul.f32 0.3045043, %v63_v12 }
  0x7e   :  { %v69_v14 = vadd.f32 %v67_v11, %v65_v10 }
  0x80   :  { %v73_v23 = vadd.f32 %v71_v20, %v69_v14 }
  0x82   :  { %v60_v15 = vpop.permute.xlu1 %59  ;;  %v56_v17 = vpop.permute.xlu0 %55  ;;  %v75_v27 = vrot.slane %v73_v23, 7  ;;  %v80_v28 = vrot.slane %v73_v23, 1  ;;  %v89_v39 = vmul.f32 0.3909913, %v73_v23 }
  0x83   :  { %v62_v18 = vsel %vm471_vm0, %v60_v15, %v56_v17  ;;  %v64_v19 = vsel %vm477_vm1, %v56_v17, %v60_v15 }
  0x84   :  { %v68_v21 = vmul.f32 0.3045043, %v62_v18  ;;  %v72_v25 = vmul.f32 0.3045043, %v64_v19 }
  0x86   :  { %v70_v24 = vadd.f32 %v68_v21, %v66_v16 }
  0x88   :  { %v74_v26 = vadd.f32 %v72_v25, %v70_v24 }
  0x8a   :  { %v76_v29 = vrot.slane %v74_v26, 7  ;;  %v81_v30 = vrot.slane %v74_v26, 1  ;;  %v90_v37 = vmul.f32 0.3909913, %v74_v26 }
  0x8c   :  { %v78_v31 = vsel %vm77_vm4, %v75_v27, %v76_v29  ;;  %v79_v32 = vsel %vm77_vm4, %v76_v29, %v75_v27  ;;  %v83_v33 = vsel %vm82_vm5, %v80_v28, %v81_v30  ;;  %v84_v34 = vsel %vm82_vm5, %v81_v30, %v80_v28 }
  0x8d   :  { %v85_v35 = vsel %vm49_vm2, %v83_v33, %v79_v32  ;;  %v88_v36 = vsel %vm52_vm3, %v78_v31, %v84_v34  ;;  %v92_v38 = vmul.f32 0.3045043, %v78_v31  ;;  %v95_v44 = vmul.f32 0.3045043, %v83_v33 }
  0x8e   :  { %v91_v40 = vmul.f32 0.3045043, %v85_v35  ;;  %v96_v41 = vmul.f32 0.3045043, %v88_v36 }
  0x8f   :  { %v94_v42 = vadd.f32 %v92_v38, %v90_v37 }
  0x90   :  { %v93_v43 = vadd.f32 %v91_v40, %v89_v39 }
  0x91   :  { %v98_v45 = vadd.f32 %v96_v41, %v94_v42 }
  0x92   :  { %v97_v46 = vadd.f32 %v95_v44, %v93_v43 }
  0x93   :  { %100 = vst [vmem:[#allocation5 + $0x8] sm:$0xff] %v98_v45  ;;  %v102_v47 = vsub.f32 %v29_v1, %v98_v45  ;;  %111 = vrot.lane.b32.xlu1 %v98_v45, %s438_s16  ;;  %v118_v55 = vmul.f32 0.3909913, %v98_v45 }
  0x94   :  { %99 = vst [vmem:[#allocation5] sm:$0xff] %v97_v46  ;;  %v101_v48 = vsub.f32 %v463_v0, %v97_v46  ;;  %109 = vrot.lane.b32.xlu0 %v97_v46, %s438_s16  ;;  %105 = vrot.lane.b32.xlu2 %v97_v46, %s439_s17  ;;  %v117_v59 = vmul.f32 0.3909913, %v97_v46 }
  0x95   :  { %104 = vst [vmem:[#allocation6 + $0x8] sm:$0xff] %v102_v47 }
  0x96   :  { %103 = vst [vmem:[#allocation6] sm:$0xff] %v101_v48 }
  0x9c   :  { %107 = vrot.lane.b32.xlu2 %v98_v45, %s439_s17 }
  0xee   :  { %v106_v49 = vpop.permute.xlu2 %105 }
  0xf6   :  { %v108_v50 = vpop.permute.xlu2 %107 }
 0x105   :  { %v112_v51 = vpop.permute.xlu1 %111 }
 0x106   :  { %v114_v52 = vsel %vm471_vm0, %v112_v51, %v108_v50  ;;  %v116_v53 = vsel %vm477_vm1, %v108_v50, %v112_v51  ;;  %v110_v54 = vpop.permute.xlu0 %109 }
 0x107   :  { %v120_v56 = vmul.f32 0.3045043, %v114_v52  ;;  %v113_v57 = vsel %vm471_vm0, %v110_v54, %v106_v49  ;;  %v115_v58 = vsel %vm477_vm1, %v106_v49, %v110_v54  ;;  %v124_v62 = vmul.f32 0.3045043, %v116_v53 }
 0x108   :  { %v119_v60 = vmul.f32 0.3045043, %v113_v57  ;;  %v123_v0 = vmul.f32 0.3045043, %v115_v58 }
 0x109   :  { %v122_v61 = vadd.f32 %v120_v56, %v118_v55 }
 0x10a   :  { %v121_v63 = vadd.f32 %v119_v60, %v117_v59 }
 0x10b   :  { %v126_v1 = vadd.f32 %v124_v62, %v122_v61 }
 0x10c   :  { %v125_v2 = vadd.f32 %v123_v0, %v121_v63 }
 0x10d   :  { %v128_v3 = vrot.slane %v126_v1, 7  ;;  %v132_v4 = vrot.slane %v126_v1, 1  ;;  %v140_v14 = vmul.f32 0.3909913, %v126_v1 }
 0x10e   :  { %v127_v6 = vrot.slane %v125_v2, 7  ;;  %v131_v7 = vrot.slane %v125_v2, 1  ;;  %v139_v18 = vmul.f32 0.3909913, %v125_v2 }
 0x110   :  { %v129_v8 = vsel %vm77_vm4, %v127_v6, %v128_v3  ;;  %v130_v10 = vsel %vm77_vm4, %v128_v3, %v127_v6  ;;  %v133_v11 = vsel %vm82_vm5, %v131_v7, %v132_v4  ;;  %v134_v12 = vsel %vm82_vm5, %v132_v4, %v131_v7 }
 0x111   :  { %v135_v15 = vsel %vm49_vm2, %v133_v11, %v130_v10  ;;  %v138_v16 = vsel %vm52_vm3, %v129_v8, %v134_v12  ;;  %v142_v17 = vmul.f32 0.3045043, %v129_v8  ;;  %v145_v24 = vmul.f32 0.3045043, %v133_v11 }
 0x112   :  { %v141_v19 = vmul.f32 0.3045043, %v135_v15  ;;  %v146_v20 = vmul.f32 0.3045043, %v138_v16 }
 0x113   :  { %v144_v21 = vadd.f32 %v142_v17, %v140_v14 }
 0x114   :  { %v143_v23 = vadd.f32 %v141_v19, %v139_v18 }
 0x115   :  { %v148_v25 = vadd.f32 %v146_v20, %v144_v21 }
 0x116   :  { %v147_v26 = vadd.f32 %v145_v24, %v143_v23 }
 0x117   :  { %159 = vrot.lane.b32.xlu0 %v148_v25, %s439_s17  ;;  %151 = vst [vmem:[#allocation5 + $0x18] sm:$0xff] %v148_v25  ;;  %v153_v27 = vsub.f32 %v98_v45, %v148_v25  ;;  %v170_v35 = vmul.f32 0.3909913, %v148_v25 }
 0x118   :  { %150 = vst [vmem:[#allocation5 + $0x10] sm:$0xff] %v147_v26  ;;  %v152_v28 = vsub.f32 %v97_v46, %v147_v26  ;;  %161 = vrot.lane.b32.xlu1 %v147_v26, %s438_s16  ;;  %157 = vrot.lane.b32.xlu2 %v147_v26, %s439_s17  ;;  %v169_v39 = vmul.f32 0.3909913, %v147_v26 }
 0x119   :  { %156 = vst [vmem:[#allocation6 + $0x18] sm:$0xff] %v153_v27 }
 0x11a   :  { %155 = vst [vmem:[#allocation6 + $0x10] sm:$0xff] %v152_v28 }
 0x120   :  { %163 = vrot.lane.b32.xlu2 %v148_v25, %s438_s16 }
 0x172   :  { %v158_v29 = vpop.permute.xlu2 %157 }
 0x17a   :  { %v164_v30 = vpop.permute.xlu2 %163 }
 0x189   :  { %v160_v31 = vpop.permute.xlu0 %159 }
 0x18a   :  { %v166_v32 = vsel %vm471_vm0, %v164_v30, %v160_v31  ;;  %v168_v33 = vsel %vm477_vm1, %v160_v31, %v164_v30  ;;  %v162_v34 = vpop.permute.xlu1 %161 }
 0x18b   :  { %v172_v36 = vmul.f32 0.3045043, %v166_v32  ;;  %v165_v37 = vsel %vm471_vm0, %v162_v34, %v158_v29  ;;  %v167_v38 = vsel %vm477_vm1, %v158_v29, %v162_v34  ;;  %v176_v42 = vmul.f32 0.3045043, %v168_v33 }
 0x18c   :  { %v171_v40 = vmul.f32 0.3045043, %v165_v37  ;;  %v175_v44 = vmul.f32 0.3045043, %v167_v38 }
 0x18d   :  { %v174_v41 = vadd.f32 %v172_v36, %v170_v35 }
 0x18e   :  { %v173_v43 = vadd.f32 %v171_v40, %v169_v39 }
 0x18f   :  { %v178_v45 = vadd.f32 %v176_v42, %v174_v41 }
 0x190   :  { %v177_v46 = vadd.f32 %v175_v44, %v173_v43 }
 0x191   :  { %v180_v47 = vrot.slane %v178_v45, 7  ;;  %v184_v48 = vrot.slane %v178_v45, 1  ;;  %v192_v55 = vmul.f32 0.3909913, %v178_v45 }
 0x192   :  { %v179_v49 = vrot.slane %v177_v46, 7  ;;  %v183_v50 = vrot.slane %v177_v46, 1  ;;  %v191_v59 = vmul.f32 0.3909913, %v177_v46 }
 0x194   :  { %v181_v51 = vsel %vm77_vm4, %v179_v49, %v180_v47  ;;  %v182_v52 = vsel %vm77_vm4, %v180_v47, %v179_v49  ;;  %v185_v53 = vsel %vm82_vm5, %v183_v50, %v184_v48  ;;  %v186_v54 = vsel %vm82_vm5, %v184_v48, %v183_v50 }
 0x195   :  { %v187_v56 = vsel %vm49_vm2, %v185_v53, %v182_v52  ;;  %v190_v57 = vsel %vm52_vm3, %v181_v51, %v186_v54  ;;  %v194_v58 = vmul.f32 0.3045043, %v181_v51  ;;  %v197_v0 = vmul.f32 0.3045043, %v185_v53 }
 0x196   :  { %v193_v60 = vmul.f32 0.3045043, %v187_v56  ;;  %v198_v61 = vmul.f32 0.3045043, %v190_v57 }
 0x197   :  { %v196_v62 = vadd.f32 %v194_v58, %v192_v55 }
 0x198   :  { %v195_v63 = vadd.f32 %v193_v60, %v191_v59 }
 0x199   :  { %v200_v1 = vadd.f32 %v198_v61, %v196_v62 }
 0x19a   :  { %v199_v2 = vadd.f32 %v197_v0, %v195_v63 }
 0x19b   :  { %211 = vrot.lane.b32.xlu1 %v200_v1, %s439_s17  ;;  %203 = vst [vmem:[#allocation5 + $0x28] sm:$0xff] %v200_v1  ;;  %v205_v3 = vsub.f32 %v148_v25, %v200_v1  ;;  %v222_v20 = vmul.f32 0.3909913, %v200_v1 }
 0x19c   :  { %202 = vst [vmem:[#allocation5 + $0x20] sm:$0xff] %v199_v2  ;;  %v204_v4 = vsub.f32 %v147_v26, %v199_v2  ;;  %213 = vrot.lane.b32.xlu2 %v199_v2, %s438_s16  ;;  %209 = vrot.lane.b32.xlu0 %v199_v2, %s439_s17  ;;  %v221_v11 = vmul.f32 0.3909913, %v199_v2 }
 0x19d   :  { %208 = vst [vmem:[#allocation6 + $0x28] sm:$0xff] %v205_v3 }
 0x19e   :  { %207 = vst [vmem:[#allocation6 + $0x20] sm:$0xff] %v204_v4 }
 0x1a4   :  { %215 = vrot.lane.b32.xlu0 %v200_v1, %s438_s16 }
 0x1f6   :  { %v214_v6 = vpop.permute.xlu2 %213 }
 0x20d   :  { %v212_v14 = vpop.permute.xlu1 %211 }
 0x20e   :  { %v210_v7 = vpop.permute.xlu0 %209 }
 0x20f   :  { %v217_v8 = vsel %vm471_vm0, %v214_v6, %v210_v7  ;;  %v219_v12 = vsel %vm477_vm1, %v210_v7, %v214_v6 }
 0x210   :  { %v223_v10 = vmul.f32 0.3045043, %v217_v8  ;;  %v227_v19 = vmul.f32 0.3045043, %v219_v12 }
 0x212   :  { %v225_v15 = vadd.f32 %v223_v10, %v221_v11 }
 0x214   :  { %v229_v23 = vadd.f32 %v227_v19, %v225_v15 }
 0x216   :  { %v216_v16 = vpop.permute.xlu0 %215  ;;  %v231_v27 = vrot.slane %v229_v23, 7  ;;  %v235_v28 = vrot.slane %v229_v23, 1  ;;  %v243_v39 = vmul.f32 0.3909913, %v229_v23 }
 0x217   :  { %v218_v17 = vsel %vm471_vm0, %v216_v16, %v212_v14  ;;  %v220_v18 = vsel %vm477_vm1, %v212_v14, %v216_v16 }
 0x218   :  { %v224_v21 = vmul.f32 0.3045043, %v218_v17  ;;  %v228_v25 = vmul.f32 0.3045043, %v220_v18 }
 0x21a   :  { %v226_v24 = vadd.f32 %v224_v21, %v222_v20 }
 0x21c   :  { %v230_v26 = vadd.f32 %v228_v25, %v226_v24 }
 0x21e   :  { %v232_v29 = vrot.slane %v230_v26, 7  ;;  %v236_v30 = vrot.slane %v230_v26, 1  ;;  %v244_v37 = vmul.f32 0.3909913, %v230_v26 }
 0x220   :  { %v233_v31 = vsel %vm77_vm4, %v231_v27, %v232_v29  ;;  %v234_v32 = vsel %vm77_vm4, %v232_v29, %v231_v27  ;;  %v237_v33 = vsel %vm82_vm5, %v235_v28, %v236_v30  ;;  %v238_v34 = vsel %vm82_vm5, %v236_v30, %v235_v28 }
 0x221   :  { %v239_v35 = vsel %vm49_vm2, %v237_v33, %v234_v32  ;;  %v242_v36 = vsel %vm52_vm3, %v233_v31, %v238_v34  ;;  %v246_v38 = vmul.f32 0.3045043, %v233_v31  ;;  %v249_v44 = vmul.f32 0.3045043, %v237_v33 }
 0x222   :  { %v245_v40 = vmul.f32 0.3045043, %v239_v35  ;;  %v250_v41 = vmul.f32 0.3045043, %v242_v36 }
 0x223   :  { %v248_v42 = vadd.f32 %v246_v38, %v244_v37 }
 0x224   :  { %v247_v43 = vadd.f32 %v245_v40, %v243_v39 }
 0x225   :  { %v582_v45 = vadd.f32 %v250_v41, %v248_v42 }
 0x226   :  { %v584_v46 = vadd.f32 %v249_v44, %v247_v43 }
 0x227   :  { %255 = vst [vmem:[#allocation5 + $0x38] sm:$0xff] %v582_v45  ;;  %v257_v47 = vsub.f32 %v200_v1, %v582_v45  ;;  %263 = vrot.lane.b32.xlu2 %v582_v45, %s439_s17  ;;  %v274_v61 = vmul.f32 0.3909913, %v582_v45 }
 0x228   :  { %254 = vst [vmem:[#allocation5 + $0x30] sm:$0xff] %v584_v46  ;;  %v256_v48 = vsub.f32 %v199_v2, %v584_v46  ;;  %265 = vrot.lane.b32.xlu0 %v584_v46, %s438_s16  ;;  %261 = vrot.lane.b32.xlu1 %v584_v46, %s439_s17  ;;  %v273_v53 = vmul.f32 0.3909913, %v584_v46 }
 0x229   :  { %260 = vst [vmem:[#allocation6 + $0x38] sm:$0xff] %v257_v47 }
 0x22a   :  { %259 = vst [vmem:[#allocation6 + $0x30] sm:$0xff] %v256_v48 }
 0x230   :  { %267 = vrot.lane.b32.xlu1 %v582_v45, %s438_s16 }
 0x281   :  { %v264_v55 = vpop.permute.xlu2 %263 }
 0x29a   :  { %v266_v49 = vpop.permute.xlu0 %265  ;;  %v262_v50 = vpop.permute.xlu1 %261 }
 0x29b   :  { %v269_v51 = vsel %vm471_vm0, %v266_v49, %v262_v50  ;;  %v271_v54 = vsel %vm477_vm1, %v262_v50, %v266_v49 }
 0x29c   :  { %v275_v52 = vmul.f32 0.3045043, %v269_v51  ;;  %v279_v60 = vmul.f32 0.3045043, %v271_v54 }
 0x29e   :  { %v277_v56 = vadd.f32 %v275_v52, %v273_v53 }
 0x2a0   :  { %v281_v63 = vadd.f32 %v279_v60, %v277_v56 }
 0x2a2   :  { %v268_v57 = vpop.permute.xlu1 %267  ;;  %v283_v3 = vrot.slane %v281_v63, 7  ;;  %v287_v4 = vrot.slane %v281_v63, 1  ;;  %v295_v16 = vmul.f32 0.3909913, %v281_v63 }
 0x2a3   :  { %v270_v58 = vsel %vm471_vm0, %v268_v57, %v264_v55  ;;  %v272_v59 = vsel %vm477_vm1, %v264_v55, %v268_v57 }
 0x2a4   :  { %v276_v62 = vmul.f32 0.3045043, %v270_v58  ;;  %v280_v1 = vmul.f32 0.3045043, %v272_v59 }
 0x2a6   :  { %v278_v0 = vadd.f32 %v276_v62, %v274_v61 }
 0x2a8   :  { %v282_v2 = vadd.f32 %v280_v1, %v278_v0 }
 0x2aa   :  { %v284_v6 = vrot.slane %v282_v2, 7  ;;  %v288_v7 = vrot.slane %v282_v2, 1  ;;  %v296_v14 = vmul.f32 0.3909913, %v282_v2 }
 0x2ac   :  { %v285_v8 = vsel %vm77_vm4, %v283_v3, %v284_v6  ;;  %v286_v5 = vsel %vm77_vm4, %v284_v6, %v283_v3  ;;  %v289_v9 = vsel %vm82_vm5, %v287_v4, %v288_v7  ;;  %v290_v10 = vsel %vm82_vm5, %v288_v7, %v287_v4 }
 0x2ad   :  { %v291_v11 = vsel %vm49_vm2, %v289_v9, %v286_v5  ;;  %v294_v12 = vsel %vm52_vm3, %v285_v8, %v290_v10  ;;  %v298_v15 = vmul.f32 0.3045043, %v285_v8  ;;  %v301_v21 = vmul.f32 0.3045043, %v289_v9 }
 0x2ae   :  { %v297_v17 = vmul.f32 0.3045043, %v291_v11  ;;  %v302_v18 = vmul.f32 0.3045043, %v294_v12 }
 0x2af   :  { %v300_v19 = vadd.f32 %v298_v15, %v296_v14 }
 0x2b0   :  { %v299_v20 = vadd.f32 %v297_v17, %v295_v16 }
 0x2b1   :  { %v304_v23 = vadd.f32 %v302_v18, %v300_v19 }
 0x2b2   :  { %v303_v13 = vadd.f32 %v301_v21, %v299_v20 }
 0x2b3   :  { %307 = vst [vmem:[#allocation5 + $0x48] sm:$0xff] %v304_v23  ;;  %v309_v22 = vsub.f32 %v582_v45, %v304_v23 }
 0x2b4   :  { %306 = vst [vmem:[#allocation5 + $0x40] sm:$0xff] %v303_v13  ;;  %v308_v24 = vsub.f32 %v584_v46, %v303_v13 }
 0x2b5   :  { %312 = vst [vmem:[#allocation6 + $0x48] sm:$0xff] %v309_v22  ;;  %325 = dma.vmem_to_hbm [thread:$0]  %s318_s18, 1280, %s320_s21, [#allocation4], %s436_s14, %s436_s14, %s437_s15  }
 0x2b6   :  { %311 = vst [vmem:[#allocation6 + $0x40] sm:$0xff] %v308_v24 }
 0x2b7   :  { %338 = dma.vmem_to_hbm [thread:$0]  %s331_s23, 1280, %s333_s26, [#allocation7], %s436_s14, %s436_s14, %s437_s15  }
 0x2b8   :  { %431 = dma.done.wait [#allocation4], 1280  }
 0x2b9   :  { %432 = vsyncadd [#allocation4], 4294966016 }
 0x2ba   :  { %433 = dma.done.wait [#allocation7], 1280  }
 0x2bb   :  { %434 = vsyncadd [#allocation7], 4294966016 }
 0x2bc   :  { %347 = vsyncpa [#allocation3], 1 }
 0x2bd   :  { %348 = vsyncpa [#allocation4], 1 }
 0x2be   :  { %349 = vsyncpa [#allocation7], 1 }

</bundles_post_ra>
